<compile_context>
chip_gen: v5e
topology: v5e:2x2
jax: 0.10.0
libtpu: 0.0.40
codegen_flags: <defaults>
</compile_context>

<pallas_src>
import functools

import jax
import jax.numpy as jnp
from jax.experimental import pallas as pl
from jax.experimental.pallas import tpu as pltpu

_LANE = 128   # vreg lane width
_SUB = 8      # vreg sublane count


def _round_up(x, m):
    return ((x + m - 1) // m) * m


def _make_ae_kernel(tb, rows_last, has_batch_pad, mm_dtype):
    """Kernel closure with static tile sizes / real-batch info baked in."""

    def ae_kernel(x_ref, we_ref, be_ref, wd_ref, bd_ref,
                  enc_ref, dec_ref, enc_sum_ref, sqerr_ref):
        x = x_ref[...]                                          # [TB, Dp] f32

        # ---- encoder: relu(x @ We + be) ---- (MXU, f32 accumulate)
        enc = jnp.dot(x.astype(mm_dtype), we_ref[...],
                      preferred_element_type=jnp.float32)
        enc = jnp.maximum(enc + be_ref[...], 0.0)               # [TB, Hp] f32

        # ---- decoder: enc @ Wd + bd ----
        dec = jnp.dot(enc.astype(mm_dtype), wd_ref[...],
                      preferred_element_type=jnp.float32)
        dec = dec + bd_ref[...]                                 # [TB, Dp] f32

        # Writeback in the (possibly narrower) output dtype -> less HBM traffic.
        enc_ref[...] = enc.astype(enc_ref.dtype)
        dec_ref[...] = dec.astype(dec_ref.dtype)

        # Partials live in sublane row 0 of a zeroed block (no 8x broadcast).
        row0 = jax.lax.broadcasted_iota(jnp.int32, (_SUB, 1), 0) == 0

        def write_partials(enc_v, diff_v):
            enc_sum = jnp.sum(enc_v, axis=0, keepdims=True)            # (1, Hp)
            sq_sum = jnp.sum(diff_v * diff_v, axis=0, keepdims=True)   # (1, Dp)
            enc_sum_ref[...] = jnp.where(row0, enc_sum, 0.0)
            sqerr_ref[...] = jnp.where(row0, sq_sum, 0.0)

        if has_batch_pad:
            is_last = pl.program_id(0) == pl.num_programs(0) - 1

            @pl.when(is_last)
            def _():
                # Mask batch-padding rows (only ever present on the last tile).
                valid = (jax.lax.broadcasted_iota(jnp.int32, (tb, 1), 0)
                         < rows_last)
                write_partials(jnp.where(valid, enc, 0.0),
                               jnp.where(valid, dec - x, 0.0))

            @pl.when(jnp.logical_not(is_last))
            def _():
                write_partials(enc, dec - x)
        else:
            write_partials(enc, dec - x)

    return ae_kernel


def autoencoder_forward(x, w_enc, b_enc, w_dec, b_dec, *,
                        rho=0.2, beta=2.0, tile_b=512,
                        matmul_dtype=jnp.bfloat16,
                        out_dtype=jnp.bfloat16,
                        rho_hat_eps=None):
    """x: [B, D]; w_enc: [D, H]; b_enc: [1, H]; w_dec: [H, D]; b_dec: [1, D].

    Returns (encoded [B,H], decoded [B,D], scalar loss), matching the PyTorch
    Autoencoder.forward: loss = MSE(decoded, x) + beta * sum(KL(rho || rho_hat)).

    For bit-accurate f32 validation pass matmul_dtype=jnp.float32 and
    out_dtype=jnp.float32; the defaults trade encoded/decoded writeback
    precision (bf16) for ~2x less HBM write traffic. Loss math stays f32.
    """
    B, D = x.shape
    H = w_enc.shape[1]
    f32 = jnp.float32
    mm_isz = jnp.dtype(matmul_dtype).itemsize
    out_isz = jnp.dtype(out_dtype).itemsize

    # Feature dims padded to lane multiples (lane-dense outputs, full MXU tiles).
    Dp = _round_up(D, _LANE)
    Hp = _round_up(H, _LANE)

    # Batch tile: multiple of 16 (bf16 sublane pairing), never 8; capped so that
    # G >= 2 whenever the batch allows it (v7x has 2 TensorCores on the
    # "parallel" grid axis).
    TB = _round_up(min(tile_b, max(B, 16)), 16)
    if B >= 32:
        TB = min(TB, _round_up(pl.cdiv(B, 2), 16))

    # Generation-aware VMEM budget: ~80% of physical VMEM (v7x: ~51 MiB,
    # v5e/v6e: ~102 MiB) leaves headroom for Mosaic-internal scratch.
    try:
        vmem_cap = int(pltpu.get_tpu_info().vmem_capacity_bytes)
    except Exception:
        vmem_cap = 64 * 2**20          # conservative fallback (v7x-sized)
    budget = (vmem_cap * 4) // 5

    def _vmem_footprint(tb):
        # Weights/biases are single-buffered (pl.Buffered(1), constant index_map).
        wbytes = 2 * Dp * Hp * mm_isz + (Hp + Dp) * 4
        # Per-tile buffers are double-buffered by the pipeline.
        tbytes = 2 * (tb * Dp * 4                                  # x tile (f32)
                      + tb * Hp * out_isz + tb * Dp * out_isz      # enc/dec tiles
                      + _SUB * (Hp + Dp) * 4)                      # partial blocks
        return wbytes + tbytes

    while _vmem_footprint(TB) > budget and TB > 16:
        TB = max(16, _round_up(TB // 2, 16))

    G = pl.cdiv(B, TB)
    Bp = G * TB
    rows_last = B - (G - 1) * TB
    has_batch_pad = Bp != B
    vmem_limit = int(min(budget, max(2 * _vmem_footprint(TB), 16 * 2**20)))

    # --- wrapper-side padding (no-ops when shapes are already aligned) ---
    xp = x.astype(f32)
    if has_batch_pad or Dp != D:
        xp = jnp.pad(xp, ((0, Bp - B), (0, Dp - D)))

    we = w_enc
    if Dp != D or Hp != H:
        we = jnp.pad(we, ((0, Dp - D), (0, Hp - H)))
    we = we.astype(matmul_dtype)

    wd = w_dec
    if Dp != D or Hp != H:
        wd = jnp.pad(wd, ((0, Hp - H), (0, Dp - D)))
    wd = wd.astype(matmul_dtype)

    be = b_enc.astype(f32)
    if Hp != H:
        be = jnp.pad(be, ((0, 0), (0, Hp - H)))
    bd = b_dec.astype(f32)
    if Dp != D:
        bd = jnp.pad(bd, ((0, 0), (0, Dp - D)))

    kernel = _make_ae_kernel(TB, rows_last, has_batch_pad, matmul_dtype)

    resident = dict(pipeline_mode=pl.Buffered(1))   # single-buffered residents

    grid_spec = pltpu.PrefetchScalarGridSpec(
        num_scalar_prefetch=0,
        grid=(G,),
        in_specs=[
            pl.BlockSpec((TB, Dp), lambda i: (i, 0)),              # x tile
            pl.BlockSpec((Dp, Hp), lambda i: (0, 0), **resident),  # w_enc
            pl.BlockSpec((1, Hp), lambda i: (0, 0), **resident),   # b_enc
            pl.BlockSpec((Hp, Dp), lambda i: (0, 0), **resident),  # w_dec
            pl.BlockSpec((1, Dp), lambda i: (0, 0), **resident),   # b_dec
        ],
        out_specs=(
            pl.BlockSpec((TB, Hp), lambda i: (i, 0)),     # encoded tile
            pl.BlockSpec((TB, Dp), lambda i: (i, 0)),     # decoded tile
            pl.BlockSpec((_SUB, Hp), lambda i: (i, 0)),   # per-tile sum(enc), row 0
            pl.BlockSpec((_SUB, Dp), lambda i: (i, 0)),   # per-tile sum((dec-x)^2), row 0
        ),
    )

    enc_p, dec_p, enc_sum_p, sqerr_p = pl.pallas_call(
        kernel,
        out_shape=(
            jax.ShapeDtypeStruct((Bp, Hp), out_dtype),
            jax.ShapeDtypeStruct((Bp, Dp), out_dtype),
            jax.ShapeDtypeStruct((G * _SUB, Hp), f32),
            jax.ShapeDtypeStruct((G * _SUB, Dp), f32),
        ),
        grid_spec=grid_spec,
        compiler_params=pltpu.CompilerParams(
            dimension_semantics=("parallel",),
            vmem_limit_bytes=vmem_limit,
        ),
    )(xp, we, be, wd, bd)

    # Slice off padding only when it exists (avoid extra HBM passes otherwise).
    encoded = enc_p if (Bp == B and Hp == H) else enc_p[:B, :H]
    decoded = dec_p if (Bp == B and Dp == D) else dec_p[:B, :D]

    # Tiny final reductions (H + 1 scalars) in the wrapper.
    # Only sublane row 0 of each tile's partial block is non-zero -> plain sums.
    rho_hat = enc_sum_p.sum(axis=0)[:H] / B
    if rho_hat_eps is not None:
        # Optional robustness clamp; off by default to match torch semantics.
        rho_hat = jnp.clip(rho_hat, rho_hat_eps, 1.0 - rho_hat_eps)
    kl = (rho * jnp.log(rho / rho_hat)
          + (1.0 - rho) * jnp.log((1.0 - rho) / (1.0 - rho_hat)))
    kl_loss = jnp.sum(kl)
    mse_loss = sqerr_p.sum() / (B * D)
    loss = mse_loss + beta * kl_loss
    return encoded, decoded, loss


def init_params(key, input_size, encoded_size):
    """Deterministic PyTorch-style Linear init: U(-1/sqrt(fan_in), 1/sqrt(fan_in))."""
    k1, k2, k3, k4 = jax.random.split(key, 4)
    lim_e = 1.0 / jnp.sqrt(jnp.float32(input_size))
    lim_d = 1.0 / jnp.sqrt(jnp.float32(encoded_size))
    # Stored pre-transposed as [in, out] for the kernel's x @ W convention.
    w_enc = jax.random.uniform(k1, (input_size, encoded_size), jnp.float32, -lim_e, lim_e)
    b_enc = jax.random.uniform(k2, (1, encoded_size), jnp.float32, -lim_e, lim_e)
    w_dec = jax.random.uniform(k3, (encoded_size, input_size), jnp.float32, -lim_d, lim_d)
    b_dec = jax.random.uniform(k4, (1, input_size), jnp.float32, -lim_d, lim_d)
    return w_enc, b_enc, w_dec, b_dec


if __name__ == "__main__":
    key = jax.random.PRNGKey(0)
    kx, kp = jax.random.split(key)

    batch = 8
    input_size = 32
    encoded_size = 16

    # Inputs in (0, 1); rho_hat_eps clamps any dead hidden units so the KL log
    # terms stay finite in the demo.
    x = jax.random.uniform(kx, (batch, input_size), jnp.float32, 0.05, 0.95)
    w_enc, b_enc, w_dec, b_dec = init_params(kp, input_size, encoded_size)

    fwd = jax.jit(functools.partial(autoencoder_forward,
                                    rho=0.2, beta=2.0, rho_hat_eps=1e-6))
    encoded, decoded, loss = fwd(x, w_enc, b_enc, w_dec, b_dec)

    jax.block_until_ready((encoded, decoded, loss))

    assert encoded.shape == (batch, encoded_size)
    assert decoded.shape == (batch, input_size)
    assert loss.shape == ()
    assert bool(jnp.isfinite(loss))

    print("KERNEL_OK")
</pallas_src>

<mosaic_0001>
module attributes {stable_mosaic.version = 11 : i64} {
  func.func @ae_kernel(%arg0: i32, %arg1: memref<16x128xf32, #tpu.memory_space<vmem>>, %arg2: memref<128x128xbf16, #tpu.memory_space<vmem>>, %arg3: memref<1x128xf32, #tpu.memory_space<vmem>>, %arg4: memref<128x128xbf16, #tpu.memory_space<vmem>>, %arg5: memref<1x128xf32, #tpu.memory_space<vmem>>, %arg6: memref<16x128xbf16, #tpu.memory_space<vmem>>, %arg7: memref<16x128xbf16, #tpu.memory_space<vmem>>, %arg8: memref<8x128xf32, #tpu.memory_space<vmem>>, %arg9: memref<8x128xf32, #tpu.memory_space<vmem>>) attributes {dimension_semantics = [#tpu.dimension_semantics<parallel>], iteration_bounds = array<i64: 1>, scalar_prefetch = 0 : i64, scratch_operands = 0 : i64, tpu.core_type = #tpu.core_type<tc>, window_params = [{transform_indices = @transform_0, window_bounds = array<i64: 16, 128>}, {pipeline_mode = #tpu.pipeline_mode<synchronous>, transform_indices = @transform_1, window_bounds = array<i64: 128, 128>}, {pipeline_mode = #tpu.pipeline_mode<synchronous>, transform_indices = @transform_2, window_bounds = array<i64: 1, 128>}, {pipeline_mode = #tpu.pipeline_mode<synchronous>, transform_indices = @transform_3, window_bounds = array<i64: 128, 128>}, {pipeline_mode = #tpu.pipeline_mode<synchronous>, transform_indices = @transform_4, window_bounds = array<i64: 1, 128>}, {transform_indices = @transform_5, window_bounds = array<i64: 16, 128>}, {transform_indices = @transform_6, window_bounds = array<i64: 16, 128>}, {transform_indices = @transform_7, window_bounds = array<i64: 8, 128>}, {transform_indices = @transform_8, window_bounds = array<i64: 8, 128>}]} {
    %c0 = arith.constant 0 : index
    %c0_0 = arith.constant 0 : index
    %0 = vector.load %arg1[%c0, %c0_0] : memref<16x128xf32, #tpu.memory_space<vmem>>, vector<16x128xf32>
    %1 = arith.truncf %0 : vector<16x128xf32> to vector<16x128xbf16>
    %c0_1 = arith.constant 0 : index
    %c0_2 = arith.constant 0 : index
    %2 = vector.load %arg2[%c0_1, %c0_2] : memref<128x128xbf16, #tpu.memory_space<vmem>>, vector<128x128xbf16>
    %cst = arith.constant dense<0.000000e+00> : vector<16x128xf32>
    %3 = tpu.matmul %1, %2, %cst {dimension_numbers = #tpu.dot_dimension_numbers<[1], [0], [0], [1], [0, 0, 1, 1], [], []>} : vector<16x128xbf16>, vector<128x128xbf16>, vector<16x128xf32> -> vector<16x128xf32>
    %c0_3 = arith.constant 0 : index
    %c0_4 = arith.constant 0 : index
    %4 = vector.load %arg3[%c0_3, %c0_4] : memref<1x128xf32, #tpu.memory_space<vmem>>, vector<1x128xf32>
    %5 = vector.broadcast %4 : vector<1x128xf32> to vector<16x128xf32>
    %6 = arith.addf %3, %5 : vector<16x128xf32>
    %cst_5 = arith.constant 0.000000e+00 : f32
    %7 = vector.broadcast %cst_5 : f32 to vector<16x128xf32>
    %8 = arith.maximumf %6, %7 : vector<16x128xf32>
    %9 = arith.truncf %8 : vector<16x128xf32> to vector<16x128xbf16>
    %c0_6 = arith.constant 0 : index
    %c0_7 = arith.constant 0 : index
    %10 = vector.load %arg4[%c0_6, %c0_7] : memref<128x128xbf16, #tpu.memory_space<vmem>>, vector<128x128xbf16>
    %cst_8 = arith.constant dense<0.000000e+00> : vector<16x128xf32>
    %11 = tpu.matmul %9, %10, %cst_8 {dimension_numbers = #tpu.dot_dimension_numbers<[1], [0], [0], [1], [0, 0, 1, 1], [], []>} : vector<16x128xbf16>, vector<128x128xbf16>, vector<16x128xf32> -> vector<16x128xf32>
    %c0_9 = arith.constant 0 : index
    %c0_10 = arith.constant 0 : index
    %12 = vector.load %arg5[%c0_9, %c0_10] : memref<1x128xf32, #tpu.memory_space<vmem>>, vector<1x128xf32>
    %13 = vector.broadcast %12 : vector<1x128xf32> to vector<16x128xf32>
    %14 = arith.addf %11, %13 : vector<16x128xf32>
    %15 = arith.truncf %8 : vector<16x128xf32> to vector<16x128xbf16>
    %c0_11 = arith.constant 0 : index
    %c0_12 = arith.constant 0 : index
    %16 = vector.load %arg6[%c0_11, %c0_12] : memref<16x128xbf16, #tpu.memory_space<vmem>>, vector<16x128xbf16>
    tpu.vector_store %arg6[%c0_11, %c0_12], %15 {strides = array<i32>} : memref<16x128xbf16, #tpu.memory_space<vmem>>, vector<16x128xbf16>,
    %17 = arith.truncf %14 : vector<16x128xf32> to vector<16x128xbf16>
    %c0_13 = arith.constant 0 : index
    %c0_14 = arith.constant 0 : index
    %18 = vector.load %arg7[%c0_13, %c0_14] : memref<16x128xbf16, #tpu.memory_space<vmem>>, vector<16x128xbf16>
    tpu.vector_store %arg7[%c0_13, %c0_14], %17 {strides = array<i32>} : memref<16x128xbf16, #tpu.memory_space<vmem>>, vector<16x128xbf16>,
    %19 = tpu.iota {dimensions = array<i32: 0>} : vector<8x1xi32>
    %c0_i32 = arith.constant 0 : i32
    %20 = vector.broadcast %c0_i32 : i32 to vector<8x1xi32>
    %21 = arith.cmpi eq, %19, %20 : vector<8x1xi32>
    %c0_i32_15 = arith.constant 0 : i32
    %22 = arith.cmpi eq, %arg0, %c0_i32_15 : i32
    %23 = arith.extui %22 : i1 to i32
    %c0_i32_16 = arith.constant 0 : i32
    %24 = arith.cmpi ne, %23, %c0_i32_16 : i32
    scf.if %24 {
      %28 = tpu.iota {dimensions = array<i32: 0>} : vector<16x1xi32>
      %c8_i32 = arith.constant 8 : i32
      %29 = vector.broadcast %c8_i32 : i32 to vector<16x1xi32>
      %30 = arith.cmpi slt, %28, %29 : vector<16x1xi32>
      %cst_18 = arith.constant 0.000000e+00 : f32
      %31 = vector.shape_cast %30 : vector<16x1xi1> to vector<16x1xi1>
      %32 = vector.broadcast %31 : vector<16x1xi1> to vector<16x128xi1>
      %33 = vector.broadcast %cst_18 : f32 to vector<16x128xf32>
      %34 = arith.select %32, %8, %33 : vector<16x128xi1>, vector<16x128xf32>
      %35 = arith.subf %14, %0 : vector<16x128xf32>
      %cst_19 = arith.constant 0.000000e+00 : f32
      %36 = vector.shape_cast %30 : vector<16x1xi1> to vector<16x1xi1>
      %37 = vector.broadcast %36 : vector<16x1xi1> to vector<16x128xi1>
      %38 = vector.broadcast %cst_19 : f32 to vector<16x128xf32>
      %39 = arith.select %37, %35, %38 : vector<16x128xi1>, vector<16x128xf32>
      %cst_20 = arith.constant dense<0.000000e+00> : vector<128xf32>
      %40 = vector.multi_reduction <add>, %34, %cst_20 [0] : vector<16x128xf32> to vector<128xf32>
      %41 = vector.shape_cast %40 : vector<128xf32> to vector<1x128xf32>
      %42 = arith.mulf %39, %39 : vector<16x128xf32>
      %cst_21 = arith.constant dense<0.000000e+00> : vector<128xf32>
      %43 = vector.multi_reduction <add>, %42, %cst_21 [0] : vector<16x128xf32> to vector<128xf32>
      %44 = vector.shape_cast %43 : vector<128xf32> to vector<1x128xf32>
      %cst_22 = arith.constant 0.000000e+00 : f32
      %45 = vector.shape_cast %21 : vector<8x1xi1> to vector<8x1xi1>
      %46 = vector.broadcast %45 : vector<8x1xi1> to vector<8x128xi1>
      %47 = vector.shape_cast %41 : vector<1x128xf32> to vector<1x128xf32>
      %48 = vector.broadcast %47 : vector<1x128xf32> to vector<8x128xf32>
      %49 = vector.broadcast %cst_22 : f32 to vector<8x128xf32>
      %50 = arith.select %46, %48, %49 : vector<8x128xi1>, vector<8x128xf32>
      %c0_23 = arith.constant 0 : index
      %c0_24 = arith.constant 0 : index
      %51 = vector.load %arg8[%c0_23, %c0_24] : memref<8x128xf32, #tpu.memory_space<vmem>>, vector<8x128xf32>
      tpu.vector_store %arg8[%c0_23, %c0_24], %50 {strides = array<i32>} : memref<8x128xf32, #tpu.memory_space<vmem>>, vector<8x128xf32>,
      %cst_25 = arith.constant 0.000000e+00 : f32
      %52 = vector.shape_cast %21 : vector<8x1xi1> to vector<8x1xi1>
      %53 = vector.broadcast %52 : vector<8x1xi1> to vector<8x128xi1>
      %54 = vector.shape_cast %44 : vector<1x128xf32> to vector<1x128xf32>
      %55 = vector.broadcast %54 : vector<1x128xf32> to vector<8x128xf32>
      %56 = vector.broadcast %cst_25 : f32 to vector<8x128xf32>
      %57 = arith.select %53, %55, %56 : vector<8x128xi1>, vector<8x128xf32>
      %c0_26 = arith.constant 0 : index
      %c0_27 = arith.constant 0 : index
      %58 = vector.load %arg9[%c0_26, %c0_27] : memref<8x128xf32, #tpu.memory_space<vmem>>, vector<8x128xf32>
      tpu.vector_store %arg9[%c0_26, %c0_27], %57 {strides = array<i32>} : memref<8x128xf32, #tpu.memory_space<vmem>>, vector<8x128xf32>,
    } else {
    }
    %true = arith.constant true
    %25 = arith.xori %22, %true : i1
    %26 = arith.extui %25 : i1 to i32
    %c0_i32_17 = arith.constant 0 : i32
    %27 = arith.cmpi ne, %26, %c0_i32_17 : i32
    scf.if %27 {
      %28 = arith.subf %14, %0 : vector<16x128xf32>
      %cst_18 = arith.constant dense<0.000000e+00> : vector<128xf32>
      %29 = vector.multi_reduction <add>, %8, %cst_18 [0] : vector<16x128xf32> to vector<128xf32>
      %30 = vector.shape_cast %29 : vector<128xf32> to vector<1x128xf32>
      %31 = arith.mulf %28, %28 : vector<16x128xf32>
      %cst_19 = arith.constant dense<0.000000e+00> : vector<128xf32>
      %32 = vector.multi_reduction <add>, %31, %cst_19 [0] : vector<16x128xf32> to vector<128xf32>
      %33 = vector.shape_cast %32 : vector<128xf32> to vector<1x128xf32>
      %cst_20 = arith.constant 0.000000e+00 : f32
      %34 = vector.shape_cast %21 : vector<8x1xi1> to vector<8x1xi1>
      %35 = vector.broadcast %34 : vector<8x1xi1> to vector<8x128xi1>
      %36 = vector.shape_cast %30 : vector<1x128xf32> to vector<1x128xf32>
      %37 = vector.broadcast %36 : vector<1x128xf32> to vector<8x128xf32>
      %38 = vector.broadcast %cst_20 : f32 to vector<8x128xf32>
      %39 = arith.select %35, %37, %38 : vector<8x128xi1>, vector<8x128xf32>
      %c0_21 = arith.constant 0 : index
      %c0_22 = arith.constant 0 : index
      %40 = vector.load %arg8[%c0_21, %c0_22] : memref<8x128xf32, #tpu.memory_space<vmem>>, vector<8x128xf32>
      tpu.vector_store %arg8[%c0_21, %c0_22], %39 {strides = array<i32>} : memref<8x128xf32, #tpu.memory_space<vmem>>, vector<8x128xf32>,
      %cst_23 = arith.constant 0.000000e+00 : f32
      %41 = vector.shape_cast %21 : vector<8x1xi1> to vector<8x1xi1>
      %42 = vector.broadcast %41 : vector<8x1xi1> to vector<8x128xi1>
      %43 = vector.shape_cast %33 : vector<1x128xf32> to vector<1x128xf32>
      %44 = vector.broadcast %43 : vector<1x128xf32> to vector<8x128xf32>
      %45 = vector.broadcast %cst_23 : f32 to vector<8x128xf32>
      %46 = arith.select %42, %44, %45 : vector<8x128xi1>, vector<8x128xf32>
      %c0_24 = arith.constant 0 : index
      %c0_25 = arith.constant 0 : index
      %47 = vector.load %arg9[%c0_24, %c0_25] : memref<8x128xf32, #tpu.memory_space<vmem>>, vector<8x128xf32>
      tpu.vector_store %arg9[%c0_24, %c0_25], %46 {strides = array<i32>} : memref<8x128xf32, #tpu.memory_space<vmem>>, vector<8x128xf32>,
    } else {
    }
    return
  }
  func.func @transform_0(%arg0: i32) -> (i32, i32) {
    %c0_i32 = arith.constant 0 : i32
    %c0_i32_0 = arith.constant 0 : i32
    return %arg0, %c0_i32 : i32, i32
  }
  func.func @transform_1(%arg0: i32) -> (i32, i32) {
    %c0_i32 = arith.constant 0 : i32
    %c0_i32_0 = arith.constant 0 : i32
    %c0_i32_1 = arith.constant 0 : i32
    return %c0_i32, %c0_i32_0 : i32, i32
  }
  func.func @transform_2(%arg0: i32) -> (i32, i32) {
    %c0_i32 = arith.constant 0 : i32
    %c0_i32_0 = arith.constant 0 : i32
    %c0_i32_1 = arith.constant 0 : i32
    return %c0_i32, %c0_i32_0 : i32, i32
  }
  func.func @transform_3(%arg0: i32) -> (i32, i32) {
    %c0_i32 = arith.constant 0 : i32
    %c0_i32_0 = arith.constant 0 : i32
    %c0_i32_1 = arith.constant 0 : i32
    return %c0_i32, %c0_i32_0 : i32, i32
  }
  func.func @transform_4(%arg0: i32) -> (i32, i32) {
    %c0_i32 = arith.constant 0 : i32
    %c0_i32_0 = arith.constant 0 : i32
    %c0_i32_1 = arith.constant 0 : i32
    return %c0_i32, %c0_i32_0 : i32, i32
  }
  func.func @transform_5(%arg0: i32) -> (i32, i32) {
    %c0_i32 = arith.constant 0 : i32
    %c0_i32_0 = arith.constant 0 : i32
    return %arg0, %c0_i32 : i32, i32
  }
  func.func @transform_6(%arg0: i32) -> (i32, i32) {
    %c0_i32 = arith.constant 0 : i32
    %c0_i32_0 = arith.constant 0 : i32
    return %arg0, %c0_i32 : i32, i32
  }
  func.func @transform_7(%arg0: i32) -> (i32, i32) {
    %c0_i32 = arith.constant 0 : i32
    %c0_i32_0 = arith.constant 0 : i32
    return %arg0, %c0_i32 : i32, i32
  }
  func.func @transform_8(%arg0: i32) -> (i32, i32) {
    %c0_i32 = arith.constant 0 : i32
    %c0_i32_0 = arith.constant 0 : i32
    return %arg0, %c0_i32 : i32, i32
  }
}

</mosaic_0001>

<bundles_post_ra>
// kernel: autoencoder_forward.1
= control target key start
LH: loop header
LB: loop body
LE: loop exit
PB: predicated region body
PF: predicated region fallthrough
CT: control target
= control target key end

     0   :  { %v207_v24 = vlaneseq  ;;  %s504_s1 = inlined_call_operand.vmem [shape: bf16[128,128], index: 1, kind: input, shape index: {}]   ;;  %s505_s3 = inlined_call_operand.vmem [shape: bf16[128,128], index: 3, kind: input, shape index: {}]   ;;  %s506_s2 = inlined_call_operand.vmem [shape: f32[1,128], index: 2, kind: input, shape index: {}]   ;;  %s507_s0 = inlined_call_operand.vmem [shape: f32[16,128], index: 0, kind: input, shape index: {}]   ;;  %s508_s4 = inlined_call_operand.vmem [shape: f32[1,128], index: 4, kind: input, shape index: {}]   ;;  %s509_s5 = inlined_call_operand.vmem [shape: bf16[16,128], index: 5, kind: output, shape index: {0}]   ;;  %s510_s7 = inlined_call_operand.vmem [shape: f32[8,128], index: 7, kind: output, shape index: {2}]   ;;  %s511_s6 = inlined_call_operand.vmem [shape: bf16[16,128], index: 6, kind: output, shape index: {1}]   ;;  %s512_s8 = inlined_call_operand.vmem [shape: f32[8,128], index: 8, kind: output, shape index: {3}]  }
   0x1   :  { %v364_v0 = vld [vmem:[%s504_s1 + $0x38] sm:$0xff]  ;;  %v363_v1 = vld [vmem:[%s504_s1 + $0x30] sm:$0xff]  ;;  %v362_v4 = vld [vmem:[%s504_s1 + $0x28] sm:$0xff] }
   0x2   :  { %95 = vmatpush.bf16.msra.mxu0 %v364_v0  ;;  %v372_v2 = vld [vmem:[%s505_s3 + $0x38] sm:$0xff]  ;;  %v371_v3 = vld [vmem:[%s505_s3 + $0x30] sm:$0xff]  ;;  %v370_v5 = vld [vmem:[%s505_s3 + $0x28] sm:$0xff]  ;;  %v208_v29 = vshrl.u32 %v207_v24, 7 }
   0x3   :  { %187 = vmatpush.bf16.msra.mxu1 %v372_v2  ;;  %v361_v6 = vld [vmem:[%s504_s1 + $0x20] sm:$0xff]  ;;  %v360_v7 = vld [vmem:[%s504_s1 + $0x18] sm:$0xff]  ;;  %v359_v8 = vld [vmem:[%s504_s1 + $0x10] sm:$0xff] }
   0x4   :  { %v358_v9 = vld [vmem:[%s504_s1 + $0x8] sm:$0xff]  ;;  %v357_v10 = vld [vmem:[%s504_s1] sm:$0xff]  ;;  %v368_v15 = vld [vmem:[%s505_s3 + $0x18] sm:$0xff]  ;;  %vm209_vm0 = vcmp.eq.s32.totalorder %v208_v29, 0 }
   0x5   :  { %v24_v11 = vld [vmem:[%s507_s0] sm:$0xff]  ;;  %v25_v12 = vld [vmem:[%s507_s0 + $0x8] sm:$0xff]  ;;  %v367_v16 = vld [vmem:[%s505_s3 + $0x10] sm:$0xff] }
   0x6   :  { %96 = vmatpush.bf16.msra.mxu0 %v363_v1  ;;  %v26_v13 = vpack.c.bf16 %v25_v12, %v24_v11  ;;  %v369_v14 = vld [vmem:[%s505_s3 + $0x20] sm:$0xff]  ;;  %v366_v17 = vld [vmem:[%s505_s3 + $0x8] sm:$0xff] }
   0x7   :  { %188 = vmatpush.bf16.msra.mxu1 %v371_v3  ;;  %v365_v18 = vld [vmem:[%s505_s3] sm:$0xff] }
   0x8   :  { %v383_v19 = vld [vmem:[%s506_s2] ss:$0 sm:$0xff] }
   0x9   :  { %v384_v41 = vld [vmem:[%s508_s4] ss:$0 sm:$0xff] }
   0xa   :  { %97 = vmatpush.bf16.msra.mxu0 %v362_v4 }
   0xb   :  { %189 = vmatpush.bf16.msra.mxu1 %v370_v5 }
   0xe   :  { %98 = vmatpush.bf16.msra.mxu0 %v361_v6 }
   0xf   :  { %190 = vmatpush.bf16.msra.mxu1 %v369_v14 }
  0x12   :  { %99 = vmatpush.bf16.msra.mxu0 %v360_v7 }
  0x13   :  { %191 = vmatpush.bf16.msra.mxu1 %v368_v15 }
  0x16   :  { %100 = vmatpush.bf16.msra.mxu0 %v359_v8 }
  0x17   :  { %192 = vmatpush.bf16.msra.mxu1 %v367_v16 }
  0x1a   :  { %101 = vmatpush.bf16.msra.mxu0 %v358_v9 }
  0x1b   :  { %193 = vmatpush.bf16.msra.mxu1 %v366_v17 }
  0x1e   :  { %102 = vmatpush.bf16.msra.mxu0 %v357_v10 }
  0x1f   :  { %194 = vmatpush.bf16.msra.mxu1 %v365_v18 }
  0x21   :  { %103 = vmatmul.bf16.vlgmr.msra.gmra.mxu0 %v26_v13 }
  0x9e   :  { %v104_v20 = vpop.f32.mrf.mxu0 }
  0x9f   :  { %v105_v21 = vadd.f32 %v383_v19, %v104_v20 }
  0xa1   :  { %v109_v22 = vmax.f32 %v105_v21, 0.0 }
  0xa3   :  { %v228_v23 = vrot.slane %v109_v22, 4  ;;  %v111_v32 = vpack.c.bf16 %v109_v22, %v109_v22 }
  0xa5   :  { %v229_v25 = vadd.f32 %v228_v23, %v109_v22  ;;  %v135_v37 = vunpack.c.l.b16 %v111_v32 }
  0xa6   :  { %v106_v26 = vpop.f32.mrf.mxu0 }
  0xa7   :  { %v230_v27 = vrot.slane %v229_v25, 2  ;;  %v107_v28 = vadd.f32 %v383_v19, %v106_v26 }
  0xa9   :  { %v231_v30 = vadd.f32 %v230_v27, %v229_v25  ;;  %v110_v31 = vmax.f32 %v107_v28, 0.0 }
  0xab   :  { %v232_v33 = vrot.slane %v231_v30, 1  ;;  %v112_v34 = vpack.c.bf16 %v110_v31, %v110_v31  ;;  %v376_v35 = vpack.c.bf16 %v110_v31, %v109_v22 }
  0xad   :  { %v233_v36 = vadd.f32 %v232_v33, %v231_v30  ;;  %377 = vst [vmem:[%s509_s5] sm:$0xff] %v376_v35   ;;  %v136_v38 = vunpack.c.l.b16 %v112_v34 }
  0xaf   :  { %v137_v39 = vpack.c.b16 %v136_v38, %v135_v37  ;;  %v245_v40 = vsel %vm209_vm0, %v233_v36, 0.0 }
  0xb0   :  { %246 = vst [vmem:[%s510_s7] sm:$0xff] %v245_v40 }
  0xb1   :  { %195 = vmatmul.bf16.vlgmr.msra.gmra.mxu1 %v137_v39 }
 0x12e   :  { %v196_v42 = vpop.f32.mrf.mxu1 }
 0x12f   :  { %v197_v43 = vadd.f32 %v384_v41, %v196_v42 }
 0x131   :  { %v223_v44 = vsub.f32 %v197_v43, %v24_v11 }
 0x133   :  { %v234_v45 = vmul.f32 %v223_v44, %v223_v44 }
 0x135   :  { %v237_v46 = vrot.slane %v234_v45, 4 }
 0x136   :  { %v198_v47 = vpop.f32.mrf.mxu1 }
 0x137   :  { %v238_v48 = vadd.f32 %v237_v46, %v234_v45  ;;  %v199_v49 = vadd.f32 %v384_v41, %v198_v47 }
 0x139   :  { %v239_v50 = vrot.slane %v238_v48, 2  ;;  %v381_v51 = vpack.c.bf16 %v199_v49, %v197_v43 }
 0x13b   :  { %v240_v52 = vadd.f32 %v239_v50, %v238_v48  ;;  %382 = vst [vmem:[%s511_s6] sm:$0xff] %v381_v51  }
 0x13d   :  { %v241_v53 = vrot.slane %v240_v52, 1 }
 0x13f   :  { %v242_v54 = vadd.f32 %v241_v53, %v240_v52 }
 0x141   :  { %v247_v55 = vsel %vm209_vm0, %v242_v54, 0.0 }
 0x142   :  { %248 = vst [vmem:[%s512_s8] sm:$0xff] %v247_v55 }

</bundles_post_ra>
